<compile_context>
chip_gen: v5e
topology: v5e:2x2
jax: 0.10.0
libtpu: 0.0.40
codegen_flags: <defaults>
</compile_context>

<pallas_src>
import functools

import jax
import jax.numpy as jnp
from jax.experimental import pallas as pl
from jax.experimental.pallas import tpu as pltpu

IN_FEATURES = 178
HIDDEN = 64
OUT_FEATURES = 5
BN_EPS = 1e-5

K_PAD = 256      # padded contraction dim (multiple of 128)
OUT_PAD = 128    # padded output lanes (multiple of 128)
TM_MAX = 1024    # batch tile (rows); sized for v7x's 64 MiB VMEM budget


def _round_up(a, b):
    return ((a + b - 1) // b) * b


def mymlp_kernel(x_ref, w1_ref, b1_ref, w2_ref, b2_ref, out_ref):
    # x_ref : (TM, 256)  bf16     w1_ref: (256, 64) bf16   b1_ref: (1, 64)  f32
    # w2_ref: (64, 128)  f32      b2_ref: (1, 128)  f32    out_ref: (TM, 128) f32
    h = jnp.dot(x_ref[...], w1_ref[...], preferred_element_type=jnp.float32)
    h = jnp.maximum(h + b1_ref[...], 0.0)                       # Linear1 + ReLU
    out = jnp.dot(h, w2_ref[...], preferred_element_type=jnp.float32)
    out_ref[...] = out + b2_ref[...]                            # Linear2


def prepare_params(params):
    """Fold BN into Linear1, pad to aligned shapes, cast big tensors to bf16."""
    scale = params["bn_gamma"] * jax.lax.rsqrt(params["bn_var"] + BN_EPS)  # (1,178)
    shift = params["bn_beta"] - params["bn_mean"] * scale                  # (1,178)
    w1_eff = scale.reshape(-1, 1) * params["w1"]                           # (178,64)
    b1_eff = params["b1"] + shift @ params["w1"]                           # (1,64)

    w1_pad = jnp.zeros((K_PAD, HIDDEN), jnp.float32).at[:IN_FEATURES].set(w1_eff)
    w2_pad = jnp.zeros((HIDDEN, OUT_PAD), jnp.float32).at[:, :OUT_FEATURES].set(params["w2"])
    b2_pad = jnp.zeros((1, OUT_PAD), jnp.float32).at[:, :OUT_FEATURES].set(params["b2"])

    return {
        "w1": w1_pad.astype(jnp.bfloat16),   # (256, 64) bf16
        "b1": b1_eff.astype(jnp.float32),    # (1, 64)   f32
        "w2": w2_pad.astype(jnp.float32),    # (64, 128) f32 (tiny; keep f32)
        "b2": b2_pad.astype(jnp.float32),    # (1, 128)  f32
    }


def _prepare_x(x, tm_max=TM_MAX):
    """Pad batch to a tile multiple and features to K_PAD; cast to bf16."""
    n = x.shape[0]
    tm = min(tm_max, _round_up(n, 8))
    n_pad = _round_up(n, tm)
    x_pad = jnp.zeros((n_pad, K_PAD), jnp.float32).at[:n, :IN_FEATURES].set(x)
    return x_pad.astype(jnp.bfloat16), tm, n_pad


@functools.partial(jax.jit, static_argnames=("tm_max",))
def mymlp_forward(x, params, tm_max=TM_MAX):
    """x: (N, 178) float32 -> (N, 5) float32 (eval-mode MyMLP forward)."""
    n = x.shape[0]
    p = prepare_params(params)
    x_bf, tm, n_pad = _prepare_x(x, tm_max)
    grid = (pl.cdiv(n_pad, tm),)

    out_padded = pl.pallas_call(
        mymlp_kernel,
        out_shape=jax.ShapeDtypeStruct((n_pad, OUT_PAD), jnp.float32),
        grid=grid,
        in_specs=[
            pl.BlockSpec((tm, K_PAD), lambda i: (i, 0)),          # x: tiled over batch
            pl.BlockSpec((K_PAD, HIDDEN), lambda i: (0, 0)),      # w1: VMEM-resident
            pl.BlockSpec((1, HIDDEN), lambda i: (0, 0)),          # b1
            pl.BlockSpec((HIDDEN, OUT_PAD), lambda i: (0, 0)),    # w2
            pl.BlockSpec((1, OUT_PAD), lambda i: (0, 0)),         # b2
        ],
        out_specs=pl.BlockSpec((tm, OUT_PAD), lambda i: (i, 0)),  # lane-dense output
        compiler_params=pltpu.CompilerParams(
            dimension_semantics=("parallel",),
        ),
    )(x_bf, p["w1"], p["b1"], p["w2"], p["b2"])

    return out_padded[:n, :OUT_FEATURES]


def init_params(key):
    """Deterministic parameter init matching the PyTorch module's shapes.

    PyTorch nn.Linear stores weight as (out, in); we store the transpose
    (in, out) so the kernel computes x @ W + b directly.
    """
    ks = jax.random.split(key, 8)
    bound1 = 1.0 / jnp.sqrt(IN_FEATURES)
    bound2 = 1.0 / jnp.sqrt(HIDDEN)
    return {
        # BatchNorm1d(178) params / running stats (kept as (1, F) for broadcast)
        "bn_gamma": jax.random.uniform(ks[0], (1, IN_FEATURES), jnp.float32, 0.5, 1.5),
        "bn_beta":  jax.random.uniform(ks[1], (1, IN_FEATURES), jnp.float32, -0.5, 0.5),
        "bn_mean":  jax.random.normal(ks[2], (1, IN_FEATURES), jnp.float32) * 0.1,
        "bn_var":   jax.random.uniform(ks[3], (1, IN_FEATURES), jnp.float32, 0.5, 1.5),
        # Linear(178, 64)
        "w1": jax.random.uniform(ks[4], (IN_FEATURES, HIDDEN), jnp.float32, -bound1, bound1),
        "b1": jax.random.uniform(ks[5], (1, HIDDEN), jnp.float32, -bound1, bound1),
        # Linear(64, 5)
        "w2": jax.random.uniform(ks[6], (HIDDEN, OUT_FEATURES), jnp.float32, -bound2, bound2),
        "b2": jax.random.uniform(ks[7], (1, OUT_FEATURES), jnp.float32, -bound2, bound2),
    }


def reference_forward_f32(x, p):
    """Plain-JAX f32 reference with the original module's eval-mode semantics."""
    xn = (x - p["bn_mean"]) * jax.lax.rsqrt(p["bn_var"] + BN_EPS) * p["bn_gamma"] + p["bn_beta"]
    h = jnp.maximum(xn @ p["w1"] + p["b1"], 0.0)
    return h @ p["w2"] + p["b2"]


def reference_forward_same_precision(x, params):
    """Plain-JAX reference using the same folded/padded bf16 weights as the kernel."""
    p = prepare_params(params)
    x_bf, _, n_pad = _prepare_x(x)
    h = jnp.dot(x_bf, p["w1"], preferred_element_type=jnp.float32) + p["b1"]
    h = jnp.maximum(h, 0.0)
    out = jnp.dot(h, p["w2"], preferred_element_type=jnp.float32) + p["b2"]
    return out[: x.shape[0], :OUT_FEATURES]


if __name__ == "__main__":
    key = jax.random.PRNGKey(0)
    k_x, k_p = jax.random.split(key)

    batch = 8
    x = jax.random.normal(k_x, (batch, IN_FEATURES), dtype=jnp.float32)
    params = init_params(k_p)

    out = mymlp_forward(x, params)
    out = jax.block_until_ready(out)
    assert out.shape == (batch, OUT_FEATURES), out.shape

    # Tight check: kernel vs plain-JAX path at identical (bf16-in / f32-acc) precision.
    ref_same = reference_forward_same_precision(x, params)
    assert jnp.allclose(out, ref_same, atol=2e-3, rtol=2e-3), "mismatch vs same-precision ref"

    # Semantic check: vs full-f32 original-module math (loose tol for bf16 storage).
    ref_f32 = reference_forward_f32(x, params)
    assert jnp.allclose(out, ref_f32, atol=3e-2, rtol=3e-2), "mismatch vs f32 module reference"

    print("KERNEL_OK")
</pallas_src>

<mosaic_0001>
module attributes {stable_mosaic.version = 11 : i64} {
  func.func @mymlp_kernel(%arg0: i32, %arg1: memref<8x256xbf16, #tpu.memory_space<vmem>>, %arg2: memref<256x64xbf16, #tpu.memory_space<vmem>>, %arg3: memref<1x64xf32, #tpu.memory_space<vmem>>, %arg4: memref<64x128xf32, #tpu.memory_space<vmem>>, %arg5: memref<1x128xf32, #tpu.memory_space<vmem>>, %arg6: memref<8x128xf32, #tpu.memory_space<vmem>>) attributes {dimension_semantics = [#tpu.dimension_semantics<parallel>], iteration_bounds = array<i64: 1>, scalar_prefetch = 0 : i64, scratch_operands = 0 : i64, tpu.core_type = #tpu.core_type<tc>, window_params = [{transform_indices = @transform_0, window_bounds = array<i64: 8, 256>}, {pipeline_mode = #tpu.pipeline_mode<synchronous>, transform_indices = @transform_1, window_bounds = array<i64: 256, 64>}, {pipeline_mode = #tpu.pipeline_mode<synchronous>, transform_indices = @transform_2, window_bounds = array<i64: 1, 64>}, {pipeline_mode = #tpu.pipeline_mode<synchronous>, transform_indices = @transform_3, window_bounds = array<i64: 64, 128>}, {pipeline_mode = #tpu.pipeline_mode<synchronous>, transform_indices = @transform_4, window_bounds = array<i64: 1, 128>}, {transform_indices = @transform_5, window_bounds = array<i64: 8, 128>}]} {
    %c0 = arith.constant 0 : index
    %c0_0 = arith.constant 0 : index
    %0 = vector.load %arg1[%c0, %c0_0] : memref<8x256xbf16, #tpu.memory_space<vmem>>, vector<8x256xbf16>
    %c0_1 = arith.constant 0 : index
    %c0_2 = arith.constant 0 : index
    %1 = vector.load %arg2[%c0_1, %c0_2] : memref<256x64xbf16, #tpu.memory_space<vmem>>, vector<256x64xbf16>
    %cst = arith.constant dense<0.000000e+00> : vector<8x64xf32>
    %2 = tpu.matmul %0, %1, %cst {dimension_numbers = #tpu.dot_dimension_numbers<[1], [0], [0], [1], [0, 0, 1, 1], [], []>} : vector<8x256xbf16>, vector<256x64xbf16>, vector<8x64xf32> -> vector<8x64xf32>
    %c0_3 = arith.constant 0 : index
    %c0_4 = arith.constant 0 : index
    %3 = vector.load %arg3[%c0_3, %c0_4] : memref<1x64xf32, #tpu.memory_space<vmem>>, vector<1x64xf32>
    %4 = vector.broadcast %3 : vector<1x64xf32> to vector<8x64xf32>
    %5 = arith.addf %2, %4 : vector<8x64xf32>
    %cst_5 = arith.constant 0.000000e+00 : f32
    %6 = vector.broadcast %cst_5 : f32 to vector<8x64xf32>
    %7 = arith.maximumf %5, %6 : vector<8x64xf32>
    %c0_6 = arith.constant 0 : index
    %c0_7 = arith.constant 0 : index
    %8 = vector.load %arg4[%c0_6, %c0_7] : memref<64x128xf32, #tpu.memory_space<vmem>>, vector<64x128xf32>
    %cst_8 = arith.constant dense<0.000000e+00> : vector<8x128xf32>
    %9 = tpu.matmul %7, %8, %cst_8 {dimension_numbers = #tpu.dot_dimension_numbers<[1], [0], [0], [1], [0, 0, 1, 1], [], []>} : vector<8x64xf32>, vector<64x128xf32>, vector<8x128xf32> -> vector<8x128xf32>
    %c0_9 = arith.constant 0 : index
    %c0_10 = arith.constant 0 : index
    %10 = vector.load %arg5[%c0_9, %c0_10] : memref<1x128xf32, #tpu.memory_space<vmem>>, vector<1x128xf32>
    %11 = vector.broadcast %10 : vector<1x128xf32> to vector<8x128xf32>
    %12 = arith.addf %9, %11 : vector<8x128xf32>
    %c0_11 = arith.constant 0 : index
    %c0_12 = arith.constant 0 : index
    %13 = vector.load %arg6[%c0_11, %c0_12] : memref<8x128xf32, #tpu.memory_space<vmem>>, vector<8x128xf32>
    tpu.vector_store %arg6[%c0_11, %c0_12], %12 {strides = array<i32>} : memref<8x128xf32, #tpu.memory_space<vmem>>, vector<8x128xf32>,
    return
  }
  func.func @transform_0(%arg0: i32) -> (i32, i32) {
    %c0_i32 = arith.constant 0 : i32
    %c0_i32_0 = arith.constant 0 : i32
    return %arg0, %c0_i32 : i32, i32
  }
  func.func @transform_1(%arg0: i32) -> (i32, i32) {
    %c0_i32 = arith.constant 0 : i32
    %c0_i32_0 = arith.constant 0 : i32
    %c0_i32_1 = arith.constant 0 : i32
    return %c0_i32, %c0_i32_0 : i32, i32
  }
  func.func @transform_2(%arg0: i32) -> (i32, i32) {
    %c0_i32 = arith.constant 0 : i32
    %c0_i32_0 = arith.constant 0 : i32
    %c0_i32_1 = arith.constant 0 : i32
    return %c0_i32, %c0_i32_0 : i32, i32
  }
  func.func @transform_3(%arg0: i32) -> (i32, i32) {
    %c0_i32 = arith.constant 0 : i32
    %c0_i32_0 = arith.constant 0 : i32
    %c0_i32_1 = arith.constant 0 : i32
    return %c0_i32, %c0_i32_0 : i32, i32
  }
  func.func @transform_4(%arg0: i32) -> (i32, i32) {
    %c0_i32 = arith.constant 0 : i32
    %c0_i32_0 = arith.constant 0 : i32
    %c0_i32_1 = arith.constant 0 : i32
    return %c0_i32, %c0_i32_0 : i32, i32
  }
  func.func @transform_5(%arg0: i32) -> (i32, i32) {
    %c0_i32 = arith.constant 0 : i32
    %c0_i32_0 = arith.constant 0 : i32
    return %arg0, %c0_i32 : i32, i32
  }
}

</mosaic_0001>

<bundles_post_ra>
// kernel: mymlp_forward.1
= control target key start
LH: loop header
LB: loop body
LE: loop exit
PB: predicated region body
PF: predicated region fallthrough
CT: control target
= control target key end

     0   :  { %s466_s0 = inlined_call_operand.vmem [shape: bf16[8,256], index: 0, kind: input, shape index: {}]   ;;  %s467_s1 = inlined_call_operand.vmem [shape: bf16[256,64], index: 1, kind: input, shape index: {}]   ;;  %s468_s2 = inlined_call_operand.vmem [shape: f32[1,64], index: 2, kind: input, shape index: {}]   ;;  %s469_s3 = inlined_call_operand.vmem [shape: f32[64,128], index: 3, kind: input, shape index: {}]   ;;  %s470_s4 = inlined_call_operand.vmem [shape: f32[1,128], index: 4, kind: input, shape index: {}]   ;;  %s471_s5 = inlined_call_operand.hbm [shape: f32[8,128], index: 5, kind: output, shape index: {}]  }
   0x1   :  { %v313_v0 = vld [vmem:[%s467_s1 + $0x38] sm:$0xff]  ;;  %v312_v2 = vld [vmem:[%s467_s1 + $0x30] sm:$0xff]  ;;  %v311_v5 = vld [vmem:[%s467_s1 + $0x28] sm:$0xff] }
   0x2   :  { %v321_v1 = vld [vmem:[%s467_s1 + $0x78] sm:$0xff]  ;;  %161 = vmatpush.bf16.msra.mxu0 %v313_v0  ;;  %v320_v3 = vld [vmem:[%s467_s1 + $0x70] sm:$0xff]  ;;  %v319_v6 = vld [vmem:[%s467_s1 + $0x68] sm:$0xff] }
   0x3   :  { %174 = vmatpush.bf16.msra.mxu1 %v321_v1  ;;  %v195_v4 = vld [vmem:[%s469_s3 + $0x38] sm:$0xff]  ;;  %v194_v7 = vld [vmem:[%s469_s3 + $0x30] sm:$0xff]  ;;  %v193_v8 = vld [vmem:[%s469_s3 + $0x28] sm:$0xff] }
   0x4   :  { %212 = vmatpush.msra.mxu2 %v195_v4 }
   0x6   :  { %162 = vmatpush.bf16.msra.mxu0 %v312_v2 }
   0x7   :  { %175 = vmatpush.bf16.msra.mxu1 %v320_v3 }
   0x8   :  { %10 = vsyncpa [#allocation3], 0  ;;  %213 = vmatpush.msra.mxu2 %v194_v7  ;;  %v310_v9 = vld [vmem:[%s467_s1 + $0x20] sm:$0xff]  ;;  %v309_v12 = vld [vmem:[%s467_s1 + $0x18] sm:$0xff]  ;;  %vm200_vm0 = vcmask 523264   ;;  %s351_s20 = smov [#allocation2]  }
   0x9   :  { %v318_v10 = vld [vmem:[%s467_s1 + $0x60] sm:$0xff]  ;;  %v317_v13 = vld [vmem:[%s467_s1 + $0x58] sm:$0xff]  ;;  %v308_v14 = vld [vmem:[%s467_s1 + $0x10] sm:$0xff]  ;;  %s232_s23 = sshll.u32 %s471_s5, 4  ;;  %s233_s23 = int_to_ptr.hbm [resolvable:$true] %s232_s23 }
   0xa   :  { %163 = vmatpush.bf16.msra.mxu0 %v311_v5  ;;  %v192_v11 = vld [vmem:[%s469_s3 + $0x20] sm:$0xff]  ;;  %214 = vmatpush.msra.mxu2 %v193_v8  ;;  %v316_v15 = vld [vmem:[%s467_s1 + $0x50] sm:$0xff]  ;;  %v307_v16 = vld [vmem:[%s467_s1 + $0x8] sm:$0xff] }
   0xb   :  { %176 = vmatpush.bf16.msra.mxu1 %v319_v6  ;;  %v315_v17 = vld [vmem:[%s467_s1 + $0x48] sm:$0xff]  ;;  %v21_v18 = vld [vmem:[%s466_s0] sm:$0xff]  ;;  %v191_v25 = vld [vmem:[%s469_s3 + $0x18] sm:$0xff] }
   0xc   :  { %215 = vmatpush.msra.mxu2 %v192_v11  ;;  %v59_v19 = vunpack.c.l.b16 %v21_v18  ;;  %v60_v20 = vunpack.c.h.b16 %v21_v18  ;;  %v306_v21 = vld [vmem:[%s467_s1] sm:$0xff]  ;;  %v190_v26 = vld [vmem:[%s469_s3 + $0x10] sm:$0xff]  ;;  %v189_v27 = vld [vmem:[%s469_s3 + $0x8] sm:$0xff] }
   0xd   :  { %v314_v22 = vld [vmem:[%s467_s1 + $0x40] sm:$0xff] }
   0xe   :  { %164 = vmatpush.bf16.msra.mxu0 %v310_v9  ;;  %v61_v23 = vpack.c.b16 %v59_v19, %v59_v19  ;;  %v62_v24 = vpack.c.b16 %v60_v20, %v60_v20  ;;  %216 = vmatpush.msra.mxu2 %v191_v25  ;;  %v188_v28 = vld [vmem:[%s469_s3] sm:$0xff]  ;;  %s230_s3 = sshll.u32 %s351_s20, 4  ;;  %s231_s3 = int_to_ptr.vmem [resolvable:$true] %s230_s3 }
   0xf   :  { %177 = vmatpush.bf16.msra.mxu1 %v318_v10  ;;  %v323_v29 = vld [vmem:[%s468_s2] ss:$0 sm:$0xff] }
  0x10   :  { %217 = vmatpush.msra.mxu2 %v190_v26  ;;  %v324_v37 = vld [vmem:[%s470_s4] ss:$0 sm:$0xff] }
  0x12   :  { %165 = vmatpush.bf16.msra.mxu0 %v309_v12  ;;  %218 = vmatpush.msra.mxu2 %v189_v27 }
  0x13   :  { %178 = vmatpush.bf16.msra.mxu1 %v317_v13 }
  0x14   :  { %219 = vmatpush.msra.mxu2 %v188_v28 }
  0x16   :  { %166 = vmatpush.bf16.msra.mxu0 %v308_v14 }
  0x17   :  { %179 = vmatpush.bf16.msra.mxu1 %v316_v15 }
  0x1a   :  { %167 = vmatpush.bf16.msra.mxu0 %v307_v16 }
  0x1b   :  { %180 = vmatpush.bf16.msra.mxu1 %v315_v17 }
  0x1e   :  { %168 = vmatpush.bf16.msra.mxu0 %v306_v21 }
  0x1f   :  { %181 = vmatpush.bf16.msra.mxu1 %v314_v22 }
  0x21   :  { %169 = vmatmul.bf16.vlgmr.msra.gmra.mxu0 %v61_v23 }
  0x22   :  { %182 = vmatmul.bf16.vlgmr.msra.gmra.mxu1 %v62_v24 }
  0x9e   :  { %v170_v30 = vpop.f32.mrf.mxu0 }
  0x9f   :  { %v183_v31 = vpop.f32.mrf.mxu1  ;;  %v171_v32 = vadd.f32 %v323_v29, %v170_v30 }
  0xa1   :  { %v184_v33 = vadd.f32 %v183_v31, %v171_v32 }
  0xa3   :  { %v187_v34 = vmax.f32 %v184_v33, 0.0 }
  0xa5   :  { %305 = vmatmul.msk.f32.vlgmr.msra.gmra.mxu2 %vm200_vm0, %v187_v34 }
  0xa6   :  { %v172_v35 = vpop.f32.mrf.mxu0 }
  0xa7   :  { %v185_v36 = vpop.f32.mrf.mxu1 }
 0x128   :  { %v221_v38 = vpop.f32.mrf.mxu2 }
 0x129   :  { %v222_v39 = vadd.f32 %v324_v37, %v221_v38 }
 0x12b   :  { %224 = vst [vmem:[#allocation2] sm:$0xff] %v222_v39 }
 0x12c   :  { %235 = dma.vmem_to_hbm [thread:$0]  %s231_s3, 128, %s233_s23, [#allocation3]  }
 0x12d   :  { %349 = dma.done.wait [#allocation3], 128  }
 0x12e   :  { %350 = vsyncadd [#allocation3], 4294967168 }
 0x12f   :  { %240 = vsyncpa [#allocation3], 1 }

</bundles_post_ra>
